<compile_context>
chip_gen: v7x
topology: tpu7x:2x2x1
jax: 0.10.0
libtpu: 0.0.40
codegen_flags: <defaults>
</compile_context>

<pallas_src>
import jax
import jax.numpy as jnp
from jax.experimental import pallas as pl
from jax.experimental.pallas import tpu as pltpu


def mlp_kernel(x_ref, w1_ref, b1_ref, w2_ref, b2_ref, w3_ref, b3_ref, o_ref):
    # One fused pass: three MXU matmuls (bf16 operands, f32 accumulation) with
    # f32 bias-add + leaky_relu on the VPU in between.
    x = x_ref[...]                                                    # bf16

    h1 = jnp.dot(x, w1_ref[...], preferred_element_type=jnp.float32) + b1_ref[...]
    h1 = jnp.where(h1 > 0, h1, 0.01 * h1)                            # f32 leaky_relu

    h2 = jnp.dot(h1.astype(jnp.bfloat16), w2_ref[...],
                 preferred_element_type=jnp.float32) + b2_ref[...]
    h2 = jnp.where(h2 > 0, h2, 0.01 * h2)

    o_ref[...] = (jnp.dot(h2.astype(jnp.bfloat16), w3_ref[...],
                          preferred_element_type=jnp.float32)
                  + b3_ref[...]).astype(o_ref.dtype)


def _round_up(n, m):
    return ((n + m - 1) // m) * m


def neural_network_forward(x, params, *, batch_tile=256):
    """x: [B, input_space] float32. params: dict of transposed weights/biases.

    Returns [B, action_space] float32.
    """
    B, D_in = x.shape
    w1, b1 = params["w1"], params["b1"]
    w2, b2 = params["w2"], params["b2"]
    w3, b3 = params["w3"], params["b3"]
    H1 = w1.shape[1]
    H2 = w2.shape[1]
    D_out = w3.shape[1]

    # --- Lane-dense output: pad the last layer to a multiple of 128 columns ---
    D_out_pad = _round_up(D_out, 128)
    if D_out_pad != D_out:
        w3p = jnp.zeros((H2, D_out_pad), w3.dtype).at[:, :D_out].set(w3)
        b3p = jnp.zeros((1, D_out_pad), b3.dtype).at[:, :D_out].set(b3)
    else:
        w3p, b3p = w3, b3

    # --- Ragged batch: cap the tile at the (8-aligned) batch, pad B to a tile
    #     multiple; padded rows are sliced away after the call. ---
    bt = min(batch_tile, _round_up(B, 8))
    B_pad = _round_up(B, bt)
    xp = x
    if B_pad != B:
        xp = jnp.zeros((B_pad, D_in), x.dtype).at[:B].set(x)

    # --- bf16 operands for the MXU; biases / accumulation / elementwise in f32 ---
    xp = xp.astype(jnp.bfloat16)
    w1b = w1.astype(jnp.bfloat16)
    w2b = w2.astype(jnp.bfloat16)
    w3b = w3p.astype(jnp.bfloat16)
    b1f = b1.astype(jnp.float32)
    b2f = b2.astype(jnp.float32)
    b3f = b3p.astype(jnp.float32)

    grid = (B_pad // bt,)

    flops = 2 * B_pad * (D_in * H1 + H1 * H2 + H2 * D_out_pad)
    bytes_accessed = (xp.size * 2                       # bf16 activations in
                      + (w1b.size + w2b.size + w3b.size) * 2   # bf16 weights
                      + (b1f.size + b2f.size + b3f.size) * 4   # f32 biases
                      + B_pad * D_out_pad * 4)                 # f32 output

    out = pl.pallas_call(
        mlp_kernel,
        out_shape=jax.ShapeDtypeStruct((B_pad, D_out_pad), jnp.float32),
        grid_spec=pltpu.PrefetchScalarGridSpec(
            num_scalar_prefetch=0,
            grid=grid,
            in_specs=[
                pl.BlockSpec((bt, D_in), lambda i: (i, 0)),        # x tile (streams)
                pl.BlockSpec((D_in, H1), lambda i: (0, 0)),        # W1^T (resident)
                pl.BlockSpec((1, H1), lambda i: (0, 0)),           # b1
                pl.BlockSpec((H1, H2), lambda i: (0, 0)),          # W2^T
                pl.BlockSpec((1, H2), lambda i: (0, 0)),           # b2
                pl.BlockSpec((H2, D_out_pad), lambda i: (0, 0)),   # W3^T (padded)
                pl.BlockSpec((1, D_out_pad), lambda i: (0, 0)),    # b3 (padded)
            ],
            out_specs=pl.BlockSpec((bt, D_out_pad), lambda i: (i, 0)),
        ),
        compiler_params=pltpu.CompilerParams(
            dimension_semantics=("parallel",)),
        cost_estimate=pl.CostEstimate(
            flops=flops, transcendentals=0, bytes_accessed=bytes_accessed),
    )(xp, w1b, b1f, w2b, b2f, w3b, b3f)

    return out[:B, :D_out]


def init_params(key, input_space, action_space, h=256):
    """Deterministic init mimicking nn.Linear's U(-1/sqrt(fan_in), 1/sqrt(fan_in)).
    Weights stored transposed: [in_features, out_features]."""
    ks = jax.random.split(key, 6)

    def uniform(k, shape, fan_in):
        bound = 1.0 / jnp.sqrt(float(fan_in))
        return jax.random.uniform(k, shape, jnp.float32, -bound, bound)

    return {
        "w1": uniform(ks[0], (input_space, h), input_space),
        "b1": uniform(ks[1], (1, h), input_space),
        "w2": uniform(ks[2], (h, h), h),
        "b2": uniform(ks[3], (1, h), h),
        "w3": uniform(ks[4], (h, action_space), h),
        "b3": uniform(ks[5], (1, action_space), h),
    }


def reference_forward_f32(x, params):
    def leaky(v):
        return jnp.where(v > 0, v, 0.01 * v)
    h1 = leaky(x @ params["w1"] + params["b1"])
    h2 = leaky(h1 @ params["w2"] + params["b2"])
    return h2 @ params["w3"] + params["b3"]


def reference_forward_bf16(x, params):
    """Matches the kernel's precision: bf16 matmul operands, f32 accumulation."""
    def leaky(v):
        return jnp.where(v > 0, v, 0.01 * v)
    bf = jnp.bfloat16
    h1 = leaky(jnp.dot(x.astype(bf), params["w1"].astype(bf),
                       preferred_element_type=jnp.float32) + params["b1"])
    h2 = leaky(jnp.dot(h1.astype(bf), params["w2"].astype(bf),
                       preferred_element_type=jnp.float32) + params["b2"])
    return (jnp.dot(h2.astype(bf), params["w3"].astype(bf),
                    preferred_element_type=jnp.float32) + params["b3"])


if __name__ == "__main__":
    input_space = 128   # module docstring: 128 -> 256 -> 256 -> 3
    action_space = 3
    batch = 8           # small test batch; wrapper handles any B via padding

    key = jax.random.PRNGKey(0)
    k_params, k_x = jax.random.split(key)
    params = init_params(k_params, input_space, action_space)
    x = jax.random.normal(k_x, (batch, input_space), jnp.float32)

    out = neural_network_forward(x, params)
    out = jax.block_until_ready(out)
    assert out.shape == (batch, action_space)

    # Tight check against a precision-matched (bf16-operand) reference.
    ref_bf16 = reference_forward_bf16(x, params)
    assert jnp.allclose(out, ref_bf16, atol=1e-2, rtol=1e-2)

    # Loose check against the full-f32 reference (bf16 operand rounding only).
    ref_f32 = reference_forward_f32(x, params)
    assert jnp.allclose(out, ref_f32, atol=6e-2, rtol=6e-2)

    print("KERNEL_OK")
</pallas_src>

<mosaic_0001>
module attributes {stable_mosaic.version = 11 : i64} {
  func.func @mlp_kernel(%arg0: i32, %arg1: memref<8x128xbf16, #tpu.memory_space<vmem>>, %arg2: memref<128x256xbf16, #tpu.memory_space<vmem>>, %arg3: memref<1x256xf32, #tpu.memory_space<vmem>>, %arg4: memref<256x256xbf16, #tpu.memory_space<vmem>>, %arg5: memref<1x256xf32, #tpu.memory_space<vmem>>, %arg6: memref<256x128xbf16, #tpu.memory_space<vmem>>, %arg7: memref<1x128xf32, #tpu.memory_space<vmem>>, %arg8: memref<8x128xf32, #tpu.memory_space<vmem>>) attributes {dimension_semantics = [#tpu.dimension_semantics<parallel>], iteration_bounds = array<i64: 1>, scalar_prefetch = 0 : i64, scratch_operands = 0 : i64, tpu.core_type = #tpu.core_type<tc>, window_params = [{transform_indices = @transform_0, window_bounds = array<i64: 8, 128>}, {pipeline_mode = #tpu.pipeline_mode<synchronous>, transform_indices = @transform_1, window_bounds = array<i64: 128, 256>}, {pipeline_mode = #tpu.pipeline_mode<synchronous>, transform_indices = @transform_2, window_bounds = array<i64: 1, 256>}, {pipeline_mode = #tpu.pipeline_mode<synchronous>, transform_indices = @transform_3, window_bounds = array<i64: 256, 256>}, {pipeline_mode = #tpu.pipeline_mode<synchronous>, transform_indices = @transform_4, window_bounds = array<i64: 1, 256>}, {pipeline_mode = #tpu.pipeline_mode<synchronous>, transform_indices = @transform_5, window_bounds = array<i64: 256, 128>}, {pipeline_mode = #tpu.pipeline_mode<synchronous>, transform_indices = @transform_6, window_bounds = array<i64: 1, 128>}, {transform_indices = @transform_7, window_bounds = array<i64: 8, 128>}]} {
    %c0 = arith.constant 0 : index
    %c0_0 = arith.constant 0 : index
    %0 = vector.load %arg1[%c0, %c0_0] : memref<8x128xbf16, #tpu.memory_space<vmem>>, vector<8x128xbf16>
    %c0_1 = arith.constant 0 : index
    %c0_2 = arith.constant 0 : index
    %1 = vector.load %arg2[%c0_1, %c0_2] : memref<128x256xbf16, #tpu.memory_space<vmem>>, vector<128x256xbf16>
    %cst = arith.constant dense<0.000000e+00> : vector<8x256xf32>
    %2 = tpu.matmul %0, %1, %cst {dimension_numbers = #tpu.dot_dimension_numbers<[1], [0], [0], [1], [0, 0, 1, 1], [], []>} : vector<8x128xbf16>, vector<128x256xbf16>, vector<8x256xf32> -> vector<8x256xf32>
    %c0_3 = arith.constant 0 : index
    %c0_4 = arith.constant 0 : index
    %3 = vector.load %arg3[%c0_3, %c0_4] : memref<1x256xf32, #tpu.memory_space<vmem>>, vector<1x256xf32>
    %4 = vector.broadcast %3 : vector<1x256xf32> to vector<8x256xf32>
    %5 = arith.addf %2, %4 : vector<8x256xf32>
    %cst_5 = arith.constant 0.000000e+00 : f32
    %6 = vector.broadcast %cst_5 : f32 to vector<8x256xf32>
    %7 = arith.cmpf ogt, %5, %6 : vector<8x256xf32>
    %cst_6 = arith.constant 0.00999999977 : f32
    %8 = vector.broadcast %cst_6 : f32 to vector<8x256xf32>
    %9 = arith.mulf %8, %5 : vector<8x256xf32>
    %10 = arith.select %7, %5, %9 : vector<8x256xi1>, vector<8x256xf32>
    %11 = arith.truncf %10 : vector<8x256xf32> to vector<8x256xbf16>
    %c0_7 = arith.constant 0 : index
    %c0_8 = arith.constant 0 : index
    %12 = vector.load %arg4[%c0_7, %c0_8] : memref<256x256xbf16, #tpu.memory_space<vmem>>, vector<256x256xbf16>
    %cst_9 = arith.constant dense<0.000000e+00> : vector<8x256xf32>
    %13 = tpu.matmul %11, %12, %cst_9 {dimension_numbers = #tpu.dot_dimension_numbers<[1], [0], [0], [1], [0, 0, 1, 1], [], []>} : vector<8x256xbf16>, vector<256x256xbf16>, vector<8x256xf32> -> vector<8x256xf32>
    %c0_10 = arith.constant 0 : index
    %c0_11 = arith.constant 0 : index
    %14 = vector.load %arg5[%c0_10, %c0_11] : memref<1x256xf32, #tpu.memory_space<vmem>>, vector<1x256xf32>
    %15 = vector.broadcast %14 : vector<1x256xf32> to vector<8x256xf32>
    %16 = arith.addf %13, %15 : vector<8x256xf32>
    %cst_12 = arith.constant 0.000000e+00 : f32
    %17 = vector.broadcast %cst_12 : f32 to vector<8x256xf32>
    %18 = arith.cmpf ogt, %16, %17 : vector<8x256xf32>
    %cst_13 = arith.constant 0.00999999977 : f32
    %19 = vector.broadcast %cst_13 : f32 to vector<8x256xf32>
    %20 = arith.mulf %19, %16 : vector<8x256xf32>
    %21 = arith.select %18, %16, %20 : vector<8x256xi1>, vector<8x256xf32>
    %22 = arith.truncf %21 : vector<8x256xf32> to vector<8x256xbf16>
    %c0_14 = arith.constant 0 : index
    %c0_15 = arith.constant 0 : index
    %23 = vector.load %arg6[%c0_14, %c0_15] : memref<256x128xbf16, #tpu.memory_space<vmem>>, vector<256x128xbf16>
    %cst_16 = arith.constant dense<0.000000e+00> : vector<8x128xf32>
    %24 = tpu.matmul %22, %23, %cst_16 {dimension_numbers = #tpu.dot_dimension_numbers<[1], [0], [0], [1], [0, 0, 1, 1], [], []>} : vector<8x256xbf16>, vector<256x128xbf16>, vector<8x128xf32> -> vector<8x128xf32>
    %c0_17 = arith.constant 0 : index
    %c0_18 = arith.constant 0 : index
    %25 = vector.load %arg7[%c0_17, %c0_18] : memref<1x128xf32, #tpu.memory_space<vmem>>, vector<1x128xf32>
    %26 = vector.broadcast %25 : vector<1x128xf32> to vector<8x128xf32>
    %27 = arith.addf %24, %26 : vector<8x128xf32>
    %c0_19 = arith.constant 0 : index
    %c0_20 = arith.constant 0 : index
    %28 = vector.load %arg8[%c0_19, %c0_20] : memref<8x128xf32, #tpu.memory_space<vmem>>, vector<8x128xf32>
    tpu.vector_store %arg8[%c0_19, %c0_20], %27 {strides = array<i32>} : memref<8x128xf32, #tpu.memory_space<vmem>>, vector<8x128xf32>,
    return
  }
  func.func @transform_0(%arg0: i32) -> (i32, i32) {
    %c0_i32 = arith.constant 0 : i32
    %c0_i32_0 = arith.constant 0 : i32
    return %arg0, %c0_i32 : i32, i32
  }
  func.func @transform_1(%arg0: i32) -> (i32, i32) {
    %c0_i32 = arith.constant 0 : i32
    %c0_i32_0 = arith.constant 0 : i32
    %c0_i32_1 = arith.constant 0 : i32
    return %c0_i32, %c0_i32_0 : i32, i32
  }
  func.func @transform_2(%arg0: i32) -> (i32, i32) {
    %c0_i32 = arith.constant 0 : i32
    %c0_i32_0 = arith.constant 0 : i32
    %c0_i32_1 = arith.constant 0 : i32
    return %c0_i32, %c0_i32_0 : i32, i32
  }
  func.func @transform_3(%arg0: i32) -> (i32, i32) {
    %c0_i32 = arith.constant 0 : i32
    %c0_i32_0 = arith.constant 0 : i32
    %c0_i32_1 = arith.constant 0 : i32
    return %c0_i32, %c0_i32_0 : i32, i32
  }
  func.func @transform_4(%arg0: i32) -> (i32, i32) {
    %c0_i32 = arith.constant 0 : i32
    %c0_i32_0 = arith.constant 0 : i32
    %c0_i32_1 = arith.constant 0 : i32
    return %c0_i32, %c0_i32_0 : i32, i32
  }
  func.func @transform_5(%arg0: i32) -> (i32, i32) {
    %c0_i32 = arith.constant 0 : i32
    %c0_i32_0 = arith.constant 0 : i32
    %c0_i32_1 = arith.constant 0 : i32
    return %c0_i32, %c0_i32_0 : i32, i32
  }
  func.func @transform_6(%arg0: i32) -> (i32, i32) {
    %c0_i32 = arith.constant 0 : i32
    %c0_i32_0 = arith.constant 0 : i32
    %c0_i32_1 = arith.constant 0 : i32
    return %c0_i32, %c0_i32_0 : i32, i32
  }
  func.func @transform_7(%arg0: i32) -> (i32, i32) {
    %c0_i32 = arith.constant 0 : i32
    %c0_i32_0 = arith.constant 0 : i32
    return %arg0, %c0_i32 : i32, i32
  }
}

</mosaic_0001>

<bundles_post_ra>
// kernel: tpu_custom_call.1
= control target key start
LH: loop header
LB: loop body
LE: loop exit
PB: predicated region body
PF: predicated region fallthrough
CT: control target
= control target key end

     0   :  { %12 = vsyncpa [#allocation3], 0  ;;  %s1113_s0 = inlined_call_operand.hbm [shape: bf16[8,128], index: 0, kind: input, shape index: {}]   ;;  %s1114_s1 = inlined_call_operand.hbm [shape: bf16[128,256], index: 1, kind: input, shape index: {}]   ;;  %s1115_s2 = inlined_call_operand.vmem [shape: f32[1,256], index: 2, kind: input, shape index: {}]   ;;  %s1116_s3 = inlined_call_operand.hbm [shape: bf16[256,256], index: 3, kind: input, shape index: {}]   ;;  %s1117_s4 = inlined_call_operand.vmem [shape: f32[1,256], index: 4, kind: input, shape index: {}]   ;;  %s1118_s5 = inlined_call_operand.hbm [shape: bf16[256,128], index: 5, kind: input, shape index: {}]   ;;  %s1119_s6 = inlined_call_operand.vmem [shape: f32[1,128], index: 6, kind: input, shape index: {}]   ;;  %s1120_s7 = inlined_call_operand.hbm [shape: f32[8,128], index: 7, kind: output, shape index: {}]  }
   0x1   :  { %13 = vsyncpa [#allocation6], 0 }
   0x2   :  { %14 = vsyncpa [#allocation9], 0 }
   0x3   :  { %15 = vsyncpa [#allocation4], 0  ;;  %s988_s24 = smov [#allocation5]   ;;  %s870_s28 = scalar_lea.hbm %s1114_s1, 2048 }
   0x4   :  { %s31_s25 = sshll.u32 %s988_s24, 4  ;;  %p871_p0 = scmp.ne.s32.totalorder %s1114_s1, %s870_s28  ;;  %s32_s25 = int_to_ptr.vmem [resolvable:$true] %s31_s25 }
   0x5   :  { %p874_p1 = scmp.lt.u32.totalorder %s870_s28, %s1114_s1 }
   0x7   :  { %p876_p2 = pnand %p874_p1, %p871_p0 }
   0x9   :  { %879 = shalt.err (!%p876_p2)
}
   0xa   :  { %s880_s10 = scalar_lea.vmem %s32_s25, 2048  ;;  %p885_p4 = scmp.lt.s32.totalorder %s32_s25, %s32_s25 }
   0xb   :  { %p881_p3 = scmp.ne.s32.totalorder %s32_s25, %s880_s10  ;;  %p886_p5 = scmp.lt.s32.totalorder %s880_s10, %s880_s10 }
   0xd   :  { %p887_p6 = por %p886_p5, %p885_p4 }
   0xf   :  { %p888_p7 = pnand %p887_p6, %p881_p3 }
  0x11   :  { %891 = shalt.err (!%p888_p7)
}
  0x12   :  { %s989_s11 = smov 128   ;;  %s990_s12 = smov 8  }
  0x13   :  { %37 = dma.hbm_to_vmem [thread:$0]  %s1114_s1, 2048, %s32_s25, [#allocation6], %s989_s11, %s989_s11, %s990_s12  }
  0x14   :  { %s991_s15 = smov [#allocation2]   ;;  %s992_s17 = smov [#allocation7]  }
  0x15   :  { %s22_s16 = sshll.u32 %s991_s15, 4  ;;  %s45_s18 = sshll.u32 %s992_s17, 4  ;;  %s23_s16 = int_to_ptr.vmem [resolvable:$true] %s22_s16  ;;  %s46_s18 = int_to_ptr.vmem [resolvable:$true] %s45_s18 }
  0x16   :  { %s892_s21 = scalar_lea.hbm %s1113_s0, 64 }
  0x17   :  { %p893_p8 = scmp.ne.s32.totalorder %s1113_s0, %s892_s21  ;;  %p896_p9 = scmp.lt.u32.totalorder %s892_s21, %s1113_s0 }
  0x19   :  { %p898_p10 = pnand %p896_p9, %p893_p8 }
  0x1b   :  { %901 = shalt.err (!%p898_p10)
}
  0x1c   :  { %s902_s1 = scalar_lea.vmem %s23_s16, 64  ;;  %p907_p12 = scmp.lt.s32.totalorder %s23_s16, %s23_s16 }
  0x1d   :  { %p903_p11 = scmp.ne.s32.totalorder %s23_s16, %s902_s1  ;;  %p908_p13 = scmp.lt.s32.totalorder %s902_s1, %s902_s1 }
  0x1f   :  { %p909_p0 = por %p908_p13, %p907_p12 }
  0x21   :  { %p910_p1 = pnand %p909_p0, %p903_p11 }
  0x23   :  { %913 = shalt.err (!%p910_p1)
}
  0x24   :  { %25 = dma.hbm_to_vmem [thread:$0]  %s1113_s0, 64, %s23_s16, [#allocation3]  }
  0x25   :  { %s914_s30 = scalar_lea.hbm %s1116_s3, 4096 }
  0x26   :  { %p915_p2 = scmp.ne.s32.totalorder %s1116_s3, %s914_s30  ;;  %p918_p3 = scmp.lt.u32.totalorder %s914_s30, %s1116_s3 }
  0x28   :  { %p920_p4 = pnand %p918_p3, %p915_p2 }
  0x2a   :  { %923 = shalt.err (!%p920_p4)
}
  0x2b   :  { %s924_s14 = scalar_lea.vmem %s46_s18, 4096  ;;  %p929_p6 = scmp.lt.s32.totalorder %s46_s18, %s46_s18 }
  0x2c   :  { %p925_p5 = scmp.ne.s32.totalorder %s46_s18, %s924_s14  ;;  %p930_p7 = scmp.lt.s32.totalorder %s924_s14, %s924_s14 }
  0x2e   :  { %p931_p8 = por %p930_p7, %p929_p6 }
  0x30   :  { %p932_p9 = pnand %p931_p8, %p925_p5 }
  0x32   :  { %935 = shalt.err (!%p932_p9)
}
  0x33   :  { %51 = dma.hbm_to_vmem [thread:$0]  %s1116_s3, 4096, %s46_s18, [#allocation6], %s989_s11, %s989_s11, %s990_s12  }
  0x34   :  { %s993_s16 = smov [#allocation8]   ;;  %s936_s21 = scalar_lea.hbm %s1118_s5, 2048 }
  0x35   :  { %s59_s17 = sshll.u32 %s993_s16, 4  ;;  %p937_p10 = scmp.ne.s32.totalorder %s1118_s5, %s936_s21  ;;  %s60_s17 = int_to_ptr.vmem [resolvable:$true] %s59_s17 }
  0x36   :  { %p940_p11 = scmp.lt.u32.totalorder %s936_s21, %s1118_s5 }
  0x38   :  { %p942_p12 = pnand %p940_p11, %p937_p10 }
  0x3a   :  { %945 = shalt.err (!%p942_p12)
}
  0x3b   :  { %s946_s1 = scalar_lea.vmem %s60_s17, 2048  ;;  %p951_p0 = scmp.lt.s32.totalorder %s60_s17, %s60_s17 }
  0x3c   :  { %p947_p13 = scmp.ne.s32.totalorder %s60_s17, %s946_s1  ;;  %p952_p1 = scmp.lt.s32.totalorder %s946_s1, %s946_s1 }
  0x3e   :  { %p953_p2 = por %p952_p1, %p951_p0 }
  0x40   :  { %p954_p3 = pnand %p953_p2, %p947_p13 }
  0x42   :  { %957 = shalt.err (!%p954_p3)
}
  0x43   :  { %s994_s3 = smov 64   ;;  %s995_s11 = smov 4  }
  0x44   :  { %65 = dma.hbm_to_vmem [thread:$0]  %s1118_s5, 2048, %s60_s17, [#allocation9], %s994_s3, %s994_s3, %s995_s11  }
  0x45   :  { %980 = dma.done.wait [#allocation3], 64  }
  0x46   :  { %981 = vsyncadd [#allocation3], 4294967232 }
  0x47   :  { %982 = dma.done.wait [#allocation6], 6144  }
  0x48   :  { %983 = vsyncadd [#allocation6], 4294961152 }
  0x49   :  { %984 = dma.done.wait [#allocation9], 2048  }
  0x4a   :  { %985 = vsyncadd [#allocation9], 4294965248  ;;  %v996_v0 = vmov 0   ;;  %v782_v1 = vld [vmem:[#allocation5 + $0x4] ss:$8 sps:$4 sm:$0xff]   ;;  %v858_v54 = vld [vmem:[#allocation8 + $0x50] sm:$0xff]   ;;  %v100_v62 = vlaneseq }
  0x4b   :  { %222 = vmatprep.mubr.bf16.mxu0 %v996_v0  ;;  %v784_v2 = vld [vmem:[#allocation5] ss:$8 sps:$4 sm:$0xff]   ;;  %190 = vmatprep.subr.bf16.mxu0 %v782_v1  ;;  %v785_v3 = vld [vmem:[#allocation5 + $0x14] ss:$8 sps:$4 sm:$0xff]   ;;  %v787_v4 = vld [vmem:[#allocation5 + $0x10] ss:$8 sps:$4 sm:$0xff]  }
  0x4c   :  { %191 = vmatpush1.bf16.msra.mxu0 %v784_v2  ;;  %v788_v5 = vld [vmem:[#allocation5 + $0x24] ss:$8 sps:$4 sm:$0xff]   ;;  %v790_v6 = vld [vmem:[#allocation5 + $0x20] ss:$8 sps:$4 sm:$0xff]   ;;  %v791_v7 = vld [vmem:[#allocation5 + $0x34] ss:$8 sps:$4 sm:$0xff]  }
  0x4d   :  { %192 = vmatprep.subr.bf16.mxu0 %v785_v3  ;;  %v793_v8 = vld [vmem:[#allocation5 + $0x30] ss:$8 sps:$4 sm:$0xff]   ;;  %v794_v9 = vld [vmem:[#allocation5 + $0x44] ss:$8 sps:$4 sm:$0xff]   ;;  %v808_v11 = vld [vmem:[#allocation7] ss:$8 sps:$4 sm:$0xff]  }
  0x4e   :  { %v806_v10 = vld [vmem:[#allocation7 + $0x4] ss:$8 sps:$4 sm:$0xff]   ;;  %v809_v12 = vld [vmem:[#allocation7 + $0x14] ss:$8 sps:$4 sm:$0xff]   ;;  %v796_v13 = vld [vmem:[#allocation5 + $0x40] ss:$8 sps:$4 sm:$0xff]  }
  0x4f   :  { %443 = vmatprep.subr.bf16.mxu1 %v806_v10  ;;  %v811_v14 = vld [vmem:[#allocation7 + $0x10] ss:$8 sps:$4 sm:$0xff]   ;;  %v812_v15 = vld [vmem:[#allocation7 + $0x24] ss:$8 sps:$4 sm:$0xff]   ;;  %v797_v16 = vld [vmem:[#allocation5 + $0x54] ss:$8 sps:$4 sm:$0xff]  }
  0x50   :  { %193 = vmatpush1.bf16.msra.mxu0 %v787_v4  ;;  %444 = vmatpush1.bf16.msra.mxu1 %v808_v11  ;;  %v799_v17 = vld [vmem:[#allocation5 + $0x50] ss:$8 sps:$4 sm:$0xff]   ;;  %v814_v18 = vld [vmem:[#allocation7 + $0x20] ss:$8 sps:$4 sm:$0xff]   ;;  %v815_v19 = vld [vmem:[#allocation7 + $0x34] ss:$8 sps:$4 sm:$0xff]  }
  0x51   :  { %194 = vmatprep.subr.bf16.mxu0 %v788_v5  ;;  %445 = vmatprep.subr.bf16.mxu1 %v809_v12  ;;  %v800_v20 = vld [vmem:[#allocation5 + $0x64] ss:$8 sps:$4 sm:$0xff]   ;;  %v802_v21 = vld [vmem:[#allocation5 + $0x60] ss:$8 sps:$4 sm:$0xff]   ;;  %v817_v22 = vld [vmem:[#allocation7 + $0x30] ss:$8 sps:$4 sm:$0xff]  }
  0x52   :  { %v818_v23 = vld [vmem:[#allocation7 + $0x44] ss:$8 sps:$4 sm:$0xff]   ;;  %v803_v24 = vld [vmem:[#allocation5 + $0x74] ss:$8 sps:$4 sm:$0xff]   ;;  %v805_v25 = vld [vmem:[#allocation5 + $0x70] ss:$8 sps:$4 sm:$0xff]  }
  0x53   :  { %v820_v26 = vld [vmem:[#allocation7 + $0x40] ss:$8 sps:$4 sm:$0xff]   ;;  %v821_v27 = vld [vmem:[#allocation7 + $0x54] ss:$8 sps:$4 sm:$0xff]   ;;  %v823_v29 = vld [vmem:[#allocation7 + $0x50] ss:$8 sps:$4 sm:$0xff]  }
  0x54   :  { %195 = vmatpush1.bf16.msra.mxu0 %v790_v6  ;;  %446 = vmatpush1.bf16.msra.mxu1 %v811_v14  ;;  %v81_v28 = vld [vmem:[#allocation2] sm:$0xf]  ;;  %v824_v30 = vld [vmem:[#allocation7 + $0x64] ss:$8 sps:$4 sm:$0xff]   ;;  %v826_v31 = vld [vmem:[#allocation7 + $0x60] ss:$8 sps:$4 sm:$0xff]  }
  0x55   :  { %196 = vmatprep.subr.bf16.mxu0 %v791_v7  ;;  %447 = vmatprep.subr.bf16.mxu1 %v812_v15  ;;  %v827_v32 = vld [vmem:[#allocation7 + $0x74] ss:$8 sps:$4 sm:$0xff]   ;;  %v829_v33 = vld [vmem:[#allocation7 + $0x70] ss:$8 sps:$4 sm:$0xff]   ;;  %v830_v34 = vld [vmem:[#allocation7 + $0x84] ss:$8 sps:$4 sm:$0xff]  }
  0x56   :  { %v832_v35 = vld [vmem:[#allocation7 + $0x80] ss:$8 sps:$4 sm:$0xff]   ;;  %v833_v36 = vld [vmem:[#allocation7 + $0x94] ss:$8 sps:$4 sm:$0xff]   ;;  %v835_v37 = vld [vmem:[#allocation7 + $0x90] ss:$8 sps:$4 sm:$0xff]  }
  0x57   :  { %v836_v38 = vld [vmem:[#allocation7 + $0xa4] ss:$8 sps:$4 sm:$0xff]   ;;  %v838_v39 = vld [vmem:[#allocation7 + $0xa0] ss:$8 sps:$4 sm:$0xff]   ;;  %v839_v40 = vld [vmem:[#allocation7 + $0xb4] ss:$8 sps:$4 sm:$0xff]  }
  0x58   :  { %197 = vmatpush1.bf16.msra.mxu0 %v793_v8  ;;  %448 = vmatpush1.bf16.msra.mxu1 %v814_v18  ;;  %v841_v41 = vld [vmem:[#allocation7 + $0xb0] ss:$8 sps:$4 sm:$0xff]   ;;  %v842_v42 = vld [vmem:[#allocation7 + $0xc4] ss:$8 sps:$4 sm:$0xff]   ;;  %v844_v43 = vld [vmem:[#allocation7 + $0xc0] ss:$8 sps:$4 sm:$0xff]  }
  0x59   :  { %198 = vmatprep.subr.bf16.mxu0 %v794_v9  ;;  %449 = vmatprep.subr.bf16.mxu1 %v815_v19  ;;  %v845_v44 = vld [vmem:[#allocation7 + $0xd4] ss:$8 sps:$4 sm:$0xff]   ;;  %v847_v45 = vld [vmem:[#allocation7 + $0xd0] ss:$8 sps:$4 sm:$0xff]   ;;  %v848_v46 = vld [vmem:[#allocation7 + $0xe4] ss:$8 sps:$4 sm:$0xff]  }
  0x5a   :  { %v850_v47 = vld [vmem:[#allocation7 + $0xe0] ss:$8 sps:$4 sm:$0xff]   ;;  %v851_v48 = vld [vmem:[#allocation7 + $0xf4] ss:$8 sps:$4 sm:$0xff]   ;;  %v853_v49 = vld [vmem:[#allocation7 + $0xf0] ss:$8 sps:$4 sm:$0xff]  }
  0x5b   :  { %v854_v50 = vld [vmem:[#allocation8 + $0x40] sm:$0xff]   ;;  %v856_v52 = vld [vmem:[#allocation8 + $0x48] sm:$0xff]   ;;  %v859_v55 = vld [vmem:[#allocation8 + $0x10] sm:$0xff]   ;;  %v101_v63 = vshrl.u32 %v100_v62, 7  ;;  %s997_s29 = smov [#allocation10]  }
  0x5c   :  { %199 = vmatpush1.bf16.msra.mxu0 %v796_v13  ;;  %450 = vmatpush1.bf16.msra.mxu1 %v817_v22  ;;  %v855_v51 = vld [vmem:[#allocation8] sm:$0xff]   ;;  %v857_v53 = vld [vmem:[#allocation8 + $0x8] sm:$0xff]   ;;  %v860_v56 = vld [vmem:[#allocation8 + $0x58] sm:$0xff]   ;;  %s674_s30 = sshll.u32 %s997_s29, 4  ;;  %s675_s30 = int_to_ptr.vmem [resolvable:$true] %s674_s30 }
  0x5d   :  { %200 = vmatprep.subr.bf16.mxu0 %v797_v16  ;;  %451 = vmatprep.subr.bf16.mxu1 %v818_v23  ;;  %v861_v57 = vld [vmem:[#allocation8 + $0x18] sm:$0xff]   ;;  %v862_v58 = vld [vmem:[#allocation8 + $0x60] sm:$0xff]   ;;  %v864_v60 = vld [vmem:[#allocation8 + $0x68] sm:$0xff]   ;;  %v102_v0 = vsub.s32 0, %v101_v63  ;;  %v106_v2 = vsub.s32 1, %v101_v63  ;;  %s958_s8 = scalar_lea.vmem %s675_s30, 128  ;;  %p963_p5 = scmp.lt.s32.totalorder %s675_s30, %s675_s30 }
  0x5e   :  { %v863_v59 = vld [vmem:[#allocation8 + $0x20] sm:$0xff]   ;;  %v865_v61 = vld [vmem:[#allocation8 + $0x28] sm:$0xff]   ;;  %v98_v1 = vld [vmem:[%s1115_s2] sm:$0x3]  ;;  %p959_p4 = scmp.ne.s32.totalorder %s675_s30, %s958_s8  ;;  %p964_p6 = scmp.lt.s32.totalorder %s958_s8, %s958_s8 }
  0x5f   :  { %v103_v3 = vrot.slane %v98_v1, %v102_v0  ;;  %v107_v4 = vrot.slane %v98_v1, %v106_v2  ;;  %v867_v18 = vld [vmem:[#allocation8 + $0x30] sm:$0xff]   ;;  %v868_v19 = vld [vmem:[#allocation8 + $0x78] sm:$0xff]  }
  0x60   :  { %201 = vmatpush1.bf16.msra.mxu0 %v799_v17  ;;  %452 = vmatpush1.bf16.msra.mxu1 %v820_v26  ;;  %v866_v17 = vld [vmem:[#allocation8 + $0x70] sm:$0xff]   ;;  %p965_p7 = por %p964_p6, %p963_p5 }
  0x61   :  { %202 = vmatprep.subr.bf16.mxu0 %v800_v20  ;;  %453 = vmatprep.subr.bf16.mxu1 %v821_v27  ;;  %v869_v20 = vld [vmem:[#allocation8 + $0x38] sm:$0xff]  }
  0x62   :  { %p966_p8 = pnand %p965_p7, %p959_p4 }
  0x64   :  { %203 = vmatpush1.bf16.msra.mxu0 %v802_v21  ;;  %454 = vmatpush1.bf16.msra.mxu1 %v823_v29  ;;  %v271_v21 = vld [vmem:[%s1117_s4] sm:$0x3] }
  0x65   :  { %204 = vmatprep.subr.bf16.mxu0 %v803_v24  ;;  %455 = vmatprep.subr.bf16.mxu1 %v824_v30  ;;  %v276_v22 = vrot.slane %v271_v21, %v102_v0  ;;  %v280_v23 = vrot.slane %v271_v21, %v106_v2 }
  0x68   :  { %205 = vmatpush1.bf16.msra.mxu0 %v805_v25  ;;  %456 = vmatpush1.bf16.msra.mxu1 %v826_v31 }
  0x69   :  { %457 = vmatprep.subr.bf16.mxu1 %v827_v32  ;;  %750 = vmatprep.subr.bf16.mxu0 %v854_v50 }
  0x6b   :  { %223 = vmatmul.mubr.bf16.vlgmr.msra.gmra.mrb[0].mxu0 %v81_v28 }
  0x6c   :  { %458 = vmatpush1.bf16.msra.mxu1 %v829_v33  ;;  %751 = vmatpush3.bf16.msra.mxu0 %v855_v51 }
  0x6d   :  { %459 = vmatprep.subr.bf16.mxu1 %v830_v34  ;;  %752 = vmatprep.subr.bf16.mxu0 %v856_v52 }
  0x70   :  { %460 = vmatpush1.bf16.msra.mxu1 %v832_v35  ;;  %753 = vmatpush3.bf16.msra.mxu0 %v857_v53 }
  0x71   :  { %461 = vmatprep.subr.bf16.mxu1 %v833_v36  ;;  %754 = vmatprep.subr.bf16.mxu0 %v858_v54 }
  0x74   :  { %462 = vmatpush1.bf16.msra.mxu1 %v835_v37  ;;  %755 = vmatpush3.bf16.msra.mxu0 %v859_v55  ;;  %v733_v37 = vld [vmem:[%s1119_s6] ss:$0 sm:$0xff] }
  0x75   :  { %463 = vmatprep.subr.bf16.mxu1 %v836_v38  ;;  %756 = vmatprep.subr.bf16.mxu0 %v860_v56 }
  0x78   :  { %464 = vmatpush1.bf16.msra.mxu1 %v838_v39  ;;  %757 = vmatpush3.bf16.msra.mxu0 %v861_v57 }
  0x79   :  { %465 = vmatprep.subr.bf16.mxu1 %v839_v40  ;;  %758 = vmatprep.subr.bf16.mxu0 %v862_v58 }
  0x7c   :  { %466 = vmatpush1.bf16.msra.mxu1 %v841_v41  ;;  %759 = vmatpush3.bf16.msra.mxu0 %v863_v59 }
  0x7d   :  { %467 = vmatprep.subr.bf16.mxu1 %v842_v42  ;;  %760 = vmatprep.subr.bf16.mxu0 %v864_v60 }
  0x80   :  { %468 = vmatpush1.bf16.msra.mxu1 %v844_v43  ;;  %761 = vmatpush3.bf16.msra.mxu0 %v865_v61 }
  0x81   :  { %469 = vmatprep.subr.bf16.mxu1 %v845_v44  ;;  %762 = vmatprep.subr.bf16.mxu0 %v866_v17 }
  0x84   :  { %470 = vmatpush1.bf16.msra.mxu1 %v847_v45  ;;  %763 = vmatpush3.bf16.msra.mxu0 %v867_v18 }
  0x85   :  { %471 = vmatprep.subr.bf16.mxu1 %v848_v46  ;;  %764 = vmatprep.subr.bf16.mxu0 %v868_v19 }
  0x88   :  { %472 = vmatpush1.bf16.msra.mxu1 %v850_v47  ;;  %765 = vmatpush3.bf16.msra.mxu0 %v869_v20 }
  0x89   :  { %473 = vmatprep.subr.bf16.mxu1 %v851_v48 }
  0x8c   :  { %474 = vmatpush1.bf16.msra.mxu1 %v853_v49 }
 0x13e   :  { %v224_v5 = vpop.f32.mrb[0].mxu0 }
 0x13f   :  { %v225_v6 = vadd.f32 %v224_v5, %v103_v3  ;;  %v226_v7 = vpop.f32.mrb[1].mxu0 }
 0x140   :  { %v227_v8 = vadd.f32 %v226_v7, %v107_v4  ;;  %v228_v9 = vpop.f32.mrb[2].mxu0 }
 0x141   :  { %vm231_vm0 = vcmp.gt.f32.partialorder %v225_v6, 0.0  ;;  %v233_v10 = vmul.f32 0.01, %v225_v6  ;;  %v229_v11 = vpop.f32.mrb[3].mxu0 }
 0x142   :  { %vm232_vm1 = vcmp.gt.f32.partialorder %v227_v8, 0.0  ;;  %v234_v12 = vmul.f32 0.01, %v227_v8 }
 0x143   :  { %v235_v13 = vsel %vm231_vm0, %v225_v6, %v233_v10 }
 0x144   :  { %v236_v14 = vsel %vm232_vm1, %v227_v8, %v234_v12  ;;  %v237_v16 = vpack.c.bf16 %v235_v13, %v235_v13 }
 0x145   :  { %v238_v15 = vpack.c.bf16 %v236_v14, %v236_v14 }
 0x147   :  { %475 = vmatprep.mubr.bf16.mxu1 %v238_v15 }
 0x148   :  { %476 = vmatmul.mubr.bf16.vlgmr.msra.gmra.mrb[0].mxu1 %v237_v16 }
 0x21b   :  { %v477_v24 = vpop.f32.mrb[0].mxu1 }
 0x21c   :  { %v478_v25 = vadd.f32 %v477_v24, %v276_v22  ;;  %v479_v26 = vpop.f32.mrb[1].mxu1 }
 0x21d   :  { %v480_v27 = vadd.f32 %v479_v26, %v280_v23  ;;  %v481_v28 = vpop.f32.mrb[2].mxu1 }
 0x21e   :  { %vm484_vm2 = vcmp.gt.f32.partialorder %v478_v25, 0.0  ;;  %v486_v29 = vmul.f32 0.01, %v478_v25  ;;  %v482_v30 = vpop.f32.mrb[3].mxu1 }
 0x21f   :  { %vm485_vm3 = vcmp.gt.f32.partialorder %v480_v27, 0.0  ;;  %v487_v31 = vmul.f32 0.01, %v480_v27 }
 0x220   :  { %v488_v32 = vsel %vm484_vm2, %v478_v25, %v486_v29 }
 0x221   :  { %v489_v33 = vsel %vm485_vm3, %v480_v27, %v487_v31  ;;  %v490_v35 = vpack.c.bf16 %v488_v32, %v488_v32 }
 0x222   :  { %v491_v34 = vpack.c.bf16 %v489_v33, %v489_v33 }
 0x224   :  { %659 = vmatprep.mubr.bf16.mxu0 %v491_v34 }
 0x225   :  { %660 = vmatmul.mubr.bf16.vlgmr.msra.gmra.mrb[4].mxu0 %v490_v35 }
 0x2f8   :  { %v766_v36 = vpop.f32.mrb[4].mxu0 }
 0x2f9   :  { %v767_v38 = vpop.f32.mrb[5].mxu0 }
 0x2fa   :  { %v768_v39 = vadd.f32 %v767_v38, %v766_v36  ;;  %v769_v40 = vpop.f32.mrb[6].mxu0 }
 0x2fb   :  { %v770_v41 = vpop.f32.mrb[7].mxu0 }
 0x2fc   :  { %v662_v42 = vadd.f32 %v768_v39, %v733_v37 }
 0x2fe   :  { %667 = vst [vmem:[#allocation10] sm:$0xff] %v662_v42 }
 0x2ff   :  { %969 = shalt.err (!%p966_p8)
}
 0x300   :  { %s970_s6 = scalar_lea.hbm %s1120_s7, 128 }
 0x301   :  { %p971_p9 = scmp.ne.s32.totalorder %s1120_s7, %s970_s6  ;;  %p974_p10 = scmp.lt.u32.totalorder %s970_s6, %s1120_s7 }
 0x303   :  { %p976_p11 = pnand %p974_p10, %p971_p9 }
 0x305   :  { %979 = shalt.err (!%p976_p11)
}
 0x306   :  { %677 = dma.vmem_to_hbm [thread:$0]  %s675_s30, 128, %s1120_s7, [#allocation4]  }
 0x307   :  { %986 = dma.done.wait [#allocation4], 128  }
 0x308   :  { %987 = vsyncadd [#allocation4], 4294967168 }
 0x309   :  { %681 = vsyncpa [#allocation3], 1 }
 0x30a   :  { %682 = vsyncpa [#allocation6], 1 }
 0x30b   :  { %683 = vsyncpa [#allocation9], 1 }
 0x30c   :  { %684 = vsyncpa [#allocation4], 1 }

</bundles_post_ra>
